<compile_context>
chip_gen: v7x
topology: tpu7x:2x2x1
jax: 0.10.0
libtpu: 0.0.40
codegen_flags: <defaults>
</compile_context>

<pallas_src>
import jax
import jax.numpy as jnp
from jax.experimental import pallas as pl
from jax.experimental.pallas import tpu as pltpu


def stacked_ssm_kernel(x_hbm_ref, s0_ref, lamp_ref, B_ref, C_ref, D_ref,
                       x_ref, s_ref, buf_ref, dma_sem):
    """Grid = (batch_block ["parallel"], layer ["arbitrary"]).

    x_hbm_ref: (n_bb, rows_pb, Hp) f32 in HBM (memory_space=pl.ANY)
    s0_ref   : (1, B_blk, Pp) f32   initial state, per batch block
    lamp_ref : (1, CH, Pp)    f32   row k = lam_l**(k+1), per layer (pipelined)
    B_ref    : (1, Hp, Pp)    bf16  pre-transposed input projection, per layer
    C_ref    : (1, Pp, Hp)    bf16  pre-transposed output projection, per layer
    D_ref    : (1, 1, Hp)     f32   feedthrough, per layer
    x_ref    : (1, rows_pb, Hp) f32 resident activations (row = t*B_blk + b)
    s_ref    : (1, B_blk, Pp) f32   threaded state (as in the PyTorch loop)
    buf_ref  : (rows_pb, Pp)  f32   scratch (u, overwritten by scanned states)
    """
    bb = pl.program_id(0)
    l = pl.program_id(1)
    _, rows, Hp = x_ref.shape
    _, Bt, Pp = s_ref.shape
    CH = lamp_ref.shape[1]
    chunk_rows = CH * Bt
    n_chunks = rows // chunk_rows
    n_db = CH.bit_length() - 1              # log2(CH); CH is a power of two

    # Layer 0 of each batch block: start pulling the inputs straight from HBM
    # into the resident output slab and seed the state; the wait happens after
    # the (x-independent) scan-coefficient hoisting below.
    @pl.when(l == 0)
    def _():
        pltpu.make_async_copy(x_hbm_ref.at[bb], x_ref.at[0], dma_sem).start()
        s_ref[0] = s0_ref[0]

    lam_pows = lamp_ref[0]                  # (CH, Pp)   lam^(k+1)
    Bw = B_ref[0]                           # (Hp, Pp)   bf16
    Cw = C_ref[0]                           # (Pp, Hp)   bf16
    Dv = D_ref[0]                           # (1, Hp)    f32

    # Hoisted doubling-step coefficients: coef_i[r] = lam^(2^i) if r >= 2^i*Bt else 0.
    row_idx = jax.lax.broadcasted_iota(jnp.int32, (chunk_rows, 1), 0)
    coefs = []
    for i in range(n_db):
        d = (1 << i) * Bt
        mask = (row_idx >= d).astype(jnp.float32)
        coefs.append(mask * lam_pows[(1 << i) - 1:(1 << i), :])   # (chunk_rows, Pp)
    lam1 = lam_pows[0:1, :]                 # lam^1, (1, Pp)

    @pl.when(l == 0)
    def _():
        pltpu.make_async_copy(x_hbm_ref.at[bb], x_ref.at[0], dma_sem).wait()

    x = x_ref[0]                            # (rows, Hp) f32

    # ---- input projection on the MXU (bf16 operands, f32 accumulation) ----
    u = jnp.dot(x.astype(jnp.bfloat16), Bw, preferred_element_type=jnp.float32)
    buf_ref[...] = u                        # (rows, Pp)

    # ---- chunked diagonal scan: CH timesteps per fori_loop iteration ----
    def chunk_body(c, s_prev):
        r0 = pl.multiple_of(c * chunk_rows, chunk_rows)
        b = buf_ref[pl.ds(r0, chunk_rows), :]
        # Fold the carried state into the first timestep rows:
        # u'_0 = u_0 + lam * s_prev  =>  prefix scan yields lam^(k+1)*s_prev term.
        head = b[:Bt, :] + lam1 * s_prev
        if chunk_rows > Bt:
            b = jnp.concatenate([head, b[Bt:, :]], axis=0)
        else:
            b = head
        # Constant-coefficient Hillis-Steele prefix scan (log2(CH) XLU rolls).
        for i in range(n_db):
            d = (1 << i) * Bt
            b = b + coefs[i] * pltpu.roll(b, shift=d, axis=0)
        buf_ref[pl.ds(r0, chunk_rows), :] = b
        return b[chunk_rows - Bt:, :]       # state after the chunk's last step

    s_new = jax.lax.fori_loop(0, n_chunks, chunk_body, s_ref[0],
                              unroll=min(2, n_chunks))
    s_ref[0] = s_new

    # ---- output projection + feedthrough + nonlinearity ----
    y = jnp.dot(buf_ref[...].astype(jnp.bfloat16), Cw,
                preferred_element_type=jnp.float32)
    x_ref[0] = jax.nn.gelu(y + x * Dv)      # tanh approx (torch default is erf)


def stacked_ssm(x, s0, lam, Bm, Cm, Dm):
    """x: (B, L, H) f32; s0: (B, P); lam: (n_layers, P);
       Bm: (n_layers, P, H); Cm: (n_layers, H, P); Dm: (n_layers, H)."""
    n_layers, P, H = Bm.shape
    Bt, L, _ = x.shape

    LANE = 128
    Hp = ((H + LANE - 1) // LANE) * LANE    # lane-pad hidden dim
    Pp = ((P + LANE - 1) // LANE) * LANE    # lane-pad state dim

    # ---- batch blocking: independent parallel grid axis, bounds VMEM ----
    B_blk = Bt
    while (B_blk > 1 and B_blk % 2 == 0
           and L * B_blk * (Hp + Pp) * 4 > (12 << 20)):
        B_blk //= 2
    n_bb = Bt // B_blk
    rows_pb = L * B_blk

    # Timestep chunk for the vectorized scan: power of two dividing L,
    # capped so chunk_rows = CH*B_blk <= 128 (vreg pressure).
    CH = 1
    while CH < 8 and L % (CH * 2) == 0 and (CH * 2) * B_blk <= 128:
        CH *= 2

    # ---- host-side layout prep (once, off the kernel's critical path) ----
    # Activations: (Bt, L, H) -> (n_bb, L*B_blk, Hp); row within block = t*B_blk + b.
    xT = (x.astype(jnp.float32)
          .reshape(n_bb, B_blk, L, H)
          .transpose(0, 2, 1, 3)
          .reshape(n_bb, rows_pb, H))
    x_rows = jnp.zeros((n_bb, rows_pb, Hp), jnp.float32).at[:, :, :H].set(xT)
    s0_p = jnp.zeros((n_bb, B_blk, Pp), jnp.float32).at[:, :, :P].set(
        s0.astype(jnp.float32).reshape(n_bb, B_blk, P))
    # Pre-transposed bf16 weights so in-kernel matmuls are plain (M,K)x(K,N).
    B_t = jnp.zeros((n_layers, Hp, Pp), jnp.bfloat16).at[:, :H, :P].set(
        jnp.transpose(Bm, (0, 2, 1)).astype(jnp.bfloat16))
    C_t = jnp.zeros((n_layers, Pp, Hp), jnp.bfloat16).at[:, :P, :H].set(
        jnp.transpose(Cm, (0, 2, 1)).astype(jnp.bfloat16))
    D_p = jnp.zeros((n_layers, 1, Hp), jnp.float32).at[:, 0, :H].set(
        Dm.astype(jnp.float32))
    # Lambda powers (NOT batch-replicated): lam_pows[l, k, p] = lam[l, p]**(k+1).
    lam_p = jnp.zeros((n_layers, Pp), jnp.float32).at[:, :P].set(lam.astype(jnp.float32))
    kpow = jnp.arange(1, CH + 1, dtype=jnp.float32)
    lam_pows = lam_p[:, None, :] ** kpow[None, :, None]          # (n_layers, CH, Pp)

    # VMEM budget: resident slab + scratch + double-buffered per-layer params.
    per_layer = CH * Pp * 4 + Hp * Pp * 2 + Pp * Hp * 2 + Hp * 4 + B_blk * Pp * 4
    vmem_need = (2 * rows_pb * Hp * 4 + 2 * B_blk * Pp * 4
                 + rows_pb * Pp * 4 + 2 * per_layer)
    vmem_limit = int(min(48 * 1024 * 1024, max(16 * 1024 * 1024, 2 * vmem_need)))

    grid_spec = pltpu.PrefetchScalarGridSpec(
        num_scalar_prefetch=0,
        grid=(n_bb, n_layers),
        in_specs=[
            pl.BlockSpec(memory_space=pl.ANY),                         # x (HBM, DMA'd per block)
            pl.BlockSpec((1, B_blk, Pp), lambda bb, l: (bb, 0, 0)),    # initial state
            pl.BlockSpec((1, CH, Pp), lambda bb, l: (l, 0, 0)),        # lambda powers (per layer)
            pl.BlockSpec((1, Hp, Pp), lambda bb, l: (l, 0, 0)),        # B (per layer, pipelined)
            pl.BlockSpec((1, Pp, Hp), lambda bb, l: (l, 0, 0)),        # C (per layer, pipelined)
            pl.BlockSpec((1, 1, Hp), lambda bb, l: (l, 0, 0)),         # D (per layer)
        ],
        out_specs=[
            pl.BlockSpec((1, rows_pb, Hp), lambda bb, l: (bb, 0, 0)),  # resident activations
            pl.BlockSpec((1, B_blk, Pp), lambda bb, l: (bb, 0, 0)),    # threaded state
        ],
        scratch_shapes=[
            pltpu.VMEM((rows_pb, Pp), jnp.float32),                    # u / states buffer
            pltpu.SemaphoreType.DMA(()),                               # layer-0 input DMA
        ],
    )
    out_shape = (jax.ShapeDtypeStruct((n_bb, rows_pb, Hp), jnp.float32),
                 jax.ShapeDtypeStruct((n_bb, B_blk, Pp), jnp.float32))

    y_rows, s_fin = pl.pallas_call(
        stacked_ssm_kernel,
        grid_spec=grid_spec,
        out_shape=out_shape,
        compiler_params=pltpu.CompilerParams(
            dimension_semantics=("parallel", "arbitrary"),  # layers sequentially dependent
            vmem_limit_bytes=vmem_limit),
    )(x_rows, s0_p, lam_pows, B_t, C_t, D_p)

    y = (y_rows.reshape(n_bb, L, B_blk, Hp)[:, :, :, :H]
         .transpose(0, 2, 1, 3)
         .reshape(Bt, L, H))
    return y, s_fin.reshape(Bt, Pp)[:, :P]


def ref_stacked_ssm(x, s0, lam, Bm, Cm, Dm):
    """Pure-JAX reference mirroring the PyTorch StackedSSM for-loop
    (bf16 matmul operands / f32 accumulation, like the kernel)."""
    n_layers = Bm.shape[0]
    x = x.astype(jnp.float32)
    s = s0.astype(jnp.float32)
    for i in range(n_layers):
        u = jnp.einsum('blh,ph->blp', x.astype(jnp.bfloat16),
                       Bm[i].astype(jnp.bfloat16),
                       preferred_element_type=jnp.float32)
        ys = []
        for t in range(x.shape[1]):
            s = lam[i][None, :] * s + u[:, t, :]
            ys.append(s)
        ss = jnp.stack(ys, axis=1)
        y = jnp.einsum('blp,hp->blh', ss.astype(jnp.bfloat16),
                       Cm[i].astype(jnp.bfloat16),
                       preferred_element_type=jnp.float32)
        y = y + x * Dm[i][None, None, :]
        x = jax.nn.gelu(y)
    return x, s


if __name__ == "__main__":
    key = jax.random.PRNGKey(0)
    Bt, L, H, P, n_layers = 2, 8, 32, 32, 3

    k0, k1, k2, k3, k4 = jax.random.split(key, 5)
    x = jax.random.normal(k0, (Bt, L, H), jnp.float32)
    s0 = jnp.zeros((Bt, P), jnp.float32)            # state=None -> zero initial state
    # Deterministic synthetic parameters (stable diagonal in (0.5, 0.95)).
    lam = 0.5 + 0.45 * jax.random.uniform(k1, (n_layers, P), jnp.float32)
    Bm = jax.random.normal(k2, (n_layers, P, H), jnp.float32) / jnp.sqrt(H)
    Cm = jax.random.normal(k3, (n_layers, H, P), jnp.float32) / jnp.sqrt(P)
    Dm = jax.random.normal(k4, (n_layers, H), jnp.float32)

    y, s_fin = stacked_ssm(x, s0, lam, Bm, Cm, Dm)
    jax.block_until_ready((y, s_fin))

    y_ref, s_ref_out = ref_stacked_ssm(x, s0, lam, Bm, Cm, Dm)
    assert jnp.allclose(y, y_ref, atol=1e-2, rtol=1e-2), float(jnp.max(jnp.abs(y - y_ref)))
    assert jnp.allclose(s_fin, s_ref_out, atol=1e-2, rtol=1e-2), float(jnp.max(jnp.abs(s_fin - s_ref_out)))
    print("KERNEL_OK")
</pallas_src>

<mosaic_0001>
module attributes {stable_mosaic.version = 11 : i64} {
  func.func @stacked_ssm_kernel(%arg0: i32, %arg1: i32, %arg2: memref<1x16x128xf32, #tpu.memory_space<any>>, %arg3: memref<1x2x128xf32, #tpu.memory_space<vmem>>, %arg4: memref<1x8x128xf32, #tpu.memory_space<vmem>>, %arg5: memref<1x128x128xbf16, #tpu.memory_space<vmem>>, %arg6: memref<1x128x128xbf16, #tpu.memory_space<vmem>>, %arg7: memref<1x1x128xf32, #tpu.memory_space<vmem>>, %arg8: memref<1x16x128xf32, #tpu.memory_space<vmem>>, %arg9: memref<1x2x128xf32, #tpu.memory_space<vmem>>, %arg10: memref<16x128xf32, #tpu.memory_space<vmem>>, %arg11: memref<!tpu.dma_semaphore, #tpu.memory_space<semaphore_mem>>) attributes {dimension_semantics = [#tpu.dimension_semantics<parallel>, #tpu.dimension_semantics<arbitrary>], iteration_bounds = array<i64: 1, 3>, scalar_prefetch = 0 : i64, scratch_operands = 2 : i64, tpu.core_type = #tpu.core_type<tc>, window_params = [{}, {transform_indices = @transform_1, window_bounds = array<i64: 1, 2, 128>}, {transform_indices = @transform_2, window_bounds = array<i64: 1, 8, 128>}, {transform_indices = @transform_3, window_bounds = array<i64: 1, 128, 128>}, {transform_indices = @transform_4, window_bounds = array<i64: 1, 128, 128>}, {transform_indices = @transform_5, window_bounds = array<i64: 1, 1, 128>}, {transform_indices = @transform_6, window_bounds = array<i64: 1, 16, 128>}, {transform_indices = @transform_7, window_bounds = array<i64: 1, 2, 128>}]} {
    %c0_i32 = arith.constant 0 : i32
    %0 = arith.cmpi eq, %arg1, %c0_i32 : i32
    %1 = arith.extui %0 : i1 to i32
    %c0_i32_0 = arith.constant 0 : i32
    %2 = arith.cmpi ne, %1, %c0_i32_0 : i32
    scf.if %2 {
      %c0_i32_41 = arith.constant 0 : i32
      %c0_i32_42 = arith.constant 0 : i32
      %c0_i32_43 = arith.constant 0 : i32
      %94 = tpu.memref_slice %arg2[%arg0, %c0_i32_42, %c0_i32_43] : memref<1x16x128xf32, #tpu.memory_space<any>> -> memref<1x16x128xf32, #tpu.memory_space<any>>
      %95 = tpu.memref_squeeze %94 : memref<1x16x128xf32, #tpu.memory_space<any>> -> memref<16x128xf32, #tpu.memory_space<any>>
      %c0_i32_44 = arith.constant 0 : i32
      %c0_i32_45 = arith.constant 0 : i32
      %96 = tpu.memref_slice %arg8[%c0_i32_41, %c0_i32_44, %c0_i32_45] : memref<1x16x128xf32, #tpu.memory_space<vmem>> -> memref<1x16x128xf32, #tpu.memory_space<vmem>>
      %97 = tpu.memref_squeeze %96 : memref<1x16x128xf32, #tpu.memory_space<vmem>> -> memref<16x128xf32, #tpu.memory_space<vmem>>
      tpu.enqueue_dma source(%95 : memref<16x128xf32, #tpu.memory_space<any>>) target(%97 : memref<16x128xf32, #tpu.memory_space<vmem>>) target_semaphore(%arg11 : memref<!tpu.dma_semaphore, #tpu.memory_space<semaphore_mem>>)
      %c0_46 = arith.constant 0 : index
      %c0_47 = arith.constant 0 : index
      %c0_48 = arith.constant 0 : index
      %98 = vector.load %arg3[%c0_46, %c0_47, %c0_48] : memref<1x2x128xf32, #tpu.memory_space<vmem>>, vector<1x2x128xf32>
      %99 = vector.shape_cast %98 : vector<1x2x128xf32> to vector<2x128xf32>
      %c0_49 = arith.constant 0 : index
      %c0_50 = arith.constant 0 : index
      %c0_51 = arith.constant 0 : index
      %100 = vector.load %arg9[%c0_49, %c0_50, %c0_51] : memref<1x2x128xf32, #tpu.memory_space<vmem>>, vector<1x2x128xf32>
      %101 = vector.shape_cast %100 : vector<1x2x128xf32> to vector<2x128xf32>
      %102 = vector.shape_cast %99 : vector<2x128xf32> to vector<1x2x128xf32>
      tpu.vector_store %arg9[%c0_49, %c0_50, %c0_51], %102 {strides = array<i32>} : memref<1x2x128xf32, #tpu.memory_space<vmem>>, vector<1x2x128xf32>,
    } else {
    }
    %c0 = arith.constant 0 : index
    %c0_1 = arith.constant 0 : index
    %c0_2 = arith.constant 0 : index
    %3 = vector.load %arg4[%c0, %c0_1, %c0_2] : memref<1x8x128xf32, #tpu.memory_space<vmem>>, vector<1x8x128xf32>
    %4 = vector.shape_cast %3 : vector<1x8x128xf32> to vector<8x128xf32>
    %c0_3 = arith.constant 0 : index
    %c0_4 = arith.constant 0 : index
    %c0_5 = arith.constant 0 : index
    %5 = vector.load %arg5[%c0_3, %c0_4, %c0_5] : memref<1x128x128xbf16, #tpu.memory_space<vmem>>, vector<1x128x128xbf16>
    %6 = vector.shape_cast %5 : vector<1x128x128xbf16> to vector<128x128xbf16>
    %c0_6 = arith.constant 0 : index
    %c0_7 = arith.constant 0 : index
    %c0_8 = arith.constant 0 : index
    %7 = vector.load %arg6[%c0_6, %c0_7, %c0_8] : memref<1x128x128xbf16, #tpu.memory_space<vmem>>, vector<1x128x128xbf16>
    %8 = vector.shape_cast %7 : vector<1x128x128xbf16> to vector<128x128xbf16>
    %c0_9 = arith.constant 0 : index
    %c0_10 = arith.constant 0 : index
    %c0_11 = arith.constant 0 : index
    %9 = vector.load %arg7[%c0_9, %c0_10, %c0_11] : memref<1x1x128xf32, #tpu.memory_space<vmem>>, vector<1x1x128xf32>
    %10 = vector.shape_cast %9 : vector<1x1x128xf32> to vector<1x128xf32>
    %11 = tpu.iota {dimensions = array<i32: 0>} : vector<16x1xi32>
    %c2_i32 = arith.constant 2 : i32
    %12 = vector.broadcast %c2_i32 : i32 to vector<16x1xi32>
    %13 = arith.cmpi sge, %11, %12 : vector<16x1xi32>
    %14 = arith.extui %13 : vector<16x1xi1> to vector<16x1xi32>
    %15 = arith.sitofp %14 : vector<16x1xi32> to vector<16x1xf32>
    %16 = vector.extract_strided_slice %4 {offsets = [0, 0], sizes = [1, 128], strides = [1, 1]} : vector<8x128xf32> to vector<1x128xf32>
    %17 = vector.broadcast %15 : vector<16x1xf32> to vector<16x128xf32>
    %18 = vector.broadcast %16 : vector<1x128xf32> to vector<16x128xf32>
    %19 = arith.mulf %17, %18 : vector<16x128xf32>
    %c4_i32 = arith.constant 4 : i32
    %20 = vector.broadcast %c4_i32 : i32 to vector<16x1xi32>
    %21 = arith.cmpi sge, %11, %20 : vector<16x1xi32>
    %22 = arith.extui %21 : vector<16x1xi1> to vector<16x1xi32>
    %23 = arith.sitofp %22 : vector<16x1xi32> to vector<16x1xf32>
    %24 = vector.extract_strided_slice %4 {offsets = [1, 0], sizes = [1, 128], strides = [1, 1]} : vector<8x128xf32> to vector<1x128xf32>
    %25 = vector.broadcast %23 : vector<16x1xf32> to vector<16x128xf32>
    %26 = vector.broadcast %24 : vector<1x128xf32> to vector<16x128xf32>
    %27 = arith.mulf %25, %26 : vector<16x128xf32>
    %c8_i32 = arith.constant 8 : i32
    %28 = vector.broadcast %c8_i32 : i32 to vector<16x1xi32>
    %29 = arith.cmpi sge, %11, %28 : vector<16x1xi32>
    %30 = arith.extui %29 : vector<16x1xi1> to vector<16x1xi32>
    %31 = arith.sitofp %30 : vector<16x1xi32> to vector<16x1xf32>
    %32 = vector.extract_strided_slice %4 {offsets = [3, 0], sizes = [1, 128], strides = [1, 1]} : vector<8x128xf32> to vector<1x128xf32>
    %33 = vector.broadcast %31 : vector<16x1xf32> to vector<16x128xf32>
    %34 = vector.broadcast %32 : vector<1x128xf32> to vector<16x128xf32>
    %35 = arith.mulf %33, %34 : vector<16x128xf32>
    %36 = vector.extract_strided_slice %4 {offsets = [0, 0], sizes = [1, 128], strides = [1, 1]} : vector<8x128xf32> to vector<1x128xf32>
    %c0_i32_12 = arith.constant 0 : i32
    %37 = arith.cmpi eq, %arg1, %c0_i32_12 : i32
    %38 = arith.extui %37 : i1 to i32
    %c0_i32_13 = arith.constant 0 : i32
    %39 = arith.cmpi ne, %38, %c0_i32_13 : i32
    scf.if %39 {
      %c0_i32_41 = arith.constant 0 : i32
      %c0_i32_42 = arith.constant 0 : i32
      %c0_i32_43 = arith.constant 0 : i32
      %94 = tpu.memref_slice %arg2[%arg0, %c0_i32_42, %c0_i32_43] : memref<1x16x128xf32, #tpu.memory_space<any>> -> memref<1x16x128xf32, #tpu.memory_space<any>>
      %95 = tpu.memref_squeeze %94 : memref<1x16x128xf32, #tpu.memory_space<any>> -> memref<16x128xf32, #tpu.memory_space<any>>
      %c0_i32_44 = arith.constant 0 : i32
      %c0_i32_45 = arith.constant 0 : i32
      %96 = tpu.memref_slice %arg8[%c0_i32_41, %c0_i32_44, %c0_i32_45] : memref<1x16x128xf32, #tpu.memory_space<vmem>> -> memref<1x16x128xf32, #tpu.memory_space<vmem>>
      %97 = tpu.memref_squeeze %96 : memref<1x16x128xf32, #tpu.memory_space<vmem>> -> memref<16x128xf32, #tpu.memory_space<vmem>>
      tpu.wait_dma2 semaphore(%arg11 : memref<!tpu.dma_semaphore, #tpu.memory_space<semaphore_mem>>) src(%95 : memref<16x128xf32, #tpu.memory_space<any>>) dst(%97 : memref<16x128xf32, #tpu.memory_space<vmem>>)
    } else {
    }
    %c0_14 = arith.constant 0 : index
    %c0_15 = arith.constant 0 : index
    %c0_16 = arith.constant 0 : index
    %40 = vector.load %arg8[%c0_14, %c0_15, %c0_16] : memref<1x16x128xf32, #tpu.memory_space<vmem>>, vector<1x16x128xf32>
    %41 = vector.shape_cast %40 : vector<1x16x128xf32> to vector<16x128xf32>
    %42 = arith.truncf %41 : vector<16x128xf32> to vector<16x128xbf16>
    %cst = arith.constant dense<0.000000e+00> : vector<16x128xf32>
    %43 = tpu.matmul %42, %6, %cst {dimension_numbers = #tpu.dot_dimension_numbers<[1], [0], [0], [1], [0, 0, 1, 1], [], []>} : vector<16x128xbf16>, vector<128x128xbf16>, vector<16x128xf32> -> vector<16x128xf32>
    %c0_17 = arith.constant 0 : index
    %c0_18 = arith.constant 0 : index
    %44 = vector.load %arg10[%c0_17, %c0_18] : memref<16x128xf32, #tpu.memory_space<vmem>>, vector<16x128xf32>
    tpu.vector_store %arg10[%c0_17, %c0_18], %43 {strides = array<i32>} : memref<16x128xf32, #tpu.memory_space<vmem>>, vector<16x128xf32>,
    %c0_19 = arith.constant 0 : index
    %c0_20 = arith.constant 0 : index
    %c0_21 = arith.constant 0 : index
    %45 = vector.load %arg9[%c0_19, %c0_20, %c0_21] : memref<1x2x128xf32, #tpu.memory_space<vmem>>, vector<1x2x128xf32>
    %46 = vector.shape_cast %45 : vector<1x2x128xf32> to vector<2x128xf32>
    %c0_i32_22 = arith.constant 0 : i32
    %c16_i32 = arith.constant 16 : i32
    %47 = arith.muli %c0_i32_22, %c16_i32 : i32
    %48 = tpu.assume_multiple %47, 16 : i32
    %49 = arith.index_cast %48 : i32 to index
    %c0_23 = arith.constant 0 : index
    %50 = vector.load %arg10[%49, %c0_23] : memref<16x128xf32, #tpu.memory_space<vmem>>, vector<16x128xf32>
    %51 = vector.extract_strided_slice %50 {offsets = [0, 0], sizes = [2, 128], strides = [1, 1]} : vector<16x128xf32> to vector<2x128xf32>
    %52 = vector.broadcast %36 : vector<1x128xf32> to vector<2x128xf32>
    %53 = arith.mulf %52, %46 : vector<2x128xf32>
    %54 = arith.addf %51, %53 : vector<2x128xf32>
    %55 = vector.extract_strided_slice %50 {offsets = [2, 0], sizes = [14, 128], strides = [1, 1]} : vector<16x128xf32> to vector<14x128xf32>
    %56 = tpu.concatenate %54, %55 in 0 : vector<2x128xf32>, vector<14x128xf32> -> vector<16x128xf32>
    %c2_i32_24 = arith.constant 2 : i32
    %57 = tpu.dynamic_rotate %56 by %c2_i32_24 dim 0 : vector<16x128xf32>, i32 -> vector<16x128xf32>
    %58 = arith.mulf %19, %57 : vector<16x128xf32>
    %59 = arith.addf %56, %58 : vector<16x128xf32>
    %c4_i32_25 = arith.constant 4 : i32
    %60 = tpu.dynamic_rotate %59 by %c4_i32_25 dim 0 : vector<16x128xf32>, i32 -> vector<16x128xf32>
    %61 = arith.mulf %27, %60 : vector<16x128xf32>
    %62 = arith.addf %59, %61 : vector<16x128xf32>
    %c8_i32_26 = arith.constant 8 : i32
    %63 = tpu.dynamic_rotate %62 by %c8_i32_26 dim 0 : vector<16x128xf32>, i32 -> vector<16x128xf32>
    %64 = arith.mulf %35, %63 : vector<16x128xf32>
    %65 = arith.addf %62, %64 : vector<16x128xf32>
    %66 = arith.index_cast %48 : i32 to index
    %c0_27 = arith.constant 0 : index
    %67 = vector.load %arg10[%66, %c0_27] : memref<16x128xf32, #tpu.memory_space<vmem>>, vector<16x128xf32>
    tpu.vector_store %arg10[%66, %c0_27], %65 {strides = array<i32>} : memref<16x128xf32, #tpu.memory_space<vmem>>, vector<16x128xf32>,
    %68 = vector.extract_strided_slice %65 {offsets = [14, 0], sizes = [2, 128], strides = [1, 1]} : vector<16x128xf32> to vector<2x128xf32>
    %c1_i32 = arith.constant 1 : i32
    %c0_28 = arith.constant 0 : index
    %c0_29 = arith.constant 0 : index
    %c0_30 = arith.constant 0 : index
    %69 = vector.load %arg9[%c0_28, %c0_29, %c0_30] : memref<1x2x128xf32, #tpu.memory_space<vmem>>, vector<1x2x128xf32>
    %70 = vector.shape_cast %69 : vector<1x2x128xf32> to vector<2x128xf32>
    %71 = vector.shape_cast %68 : vector<2x128xf32> to vector<1x2x128xf32>
    tpu.vector_store %arg9[%c0_28, %c0_29, %c0_30], %71 {strides = array<i32>} : memref<1x2x128xf32, #tpu.memory_space<vmem>>, vector<1x2x128xf32>,
    %c0_31 = arith.constant 0 : index
    %c0_32 = arith.constant 0 : index
    %72 = vector.load %arg10[%c0_31, %c0_32] : memref<16x128xf32, #tpu.memory_space<vmem>>, vector<16x128xf32>
    %73 = arith.truncf %72 : vector<16x128xf32> to vector<16x128xbf16>
    %cst_33 = arith.constant dense<0.000000e+00> : vector<16x128xf32>
    %74 = tpu.matmul %73, %8, %cst_33 {dimension_numbers = #tpu.dot_dimension_numbers<[1], [0], [0], [1], [0, 0, 1, 1], [], []>} : vector<16x128xbf16>, vector<128x128xbf16>, vector<16x128xf32> -> vector<16x128xf32>
    %75 = vector.broadcast %10 : vector<1x128xf32> to vector<16x128xf32>
    %76 = arith.mulf %41, %75 : vector<16x128xf32>
    %77 = arith.addf %74, %76 : vector<16x128xf32>
    %78 = arith.mulf %77, %77 : vector<16x128xf32>
    %79 = arith.mulf %77, %78 : vector<16x128xf32>
    %cst_34 = arith.constant 4.471500e-02 : f32
    %80 = vector.broadcast %cst_34 : f32 to vector<16x128xf32>
    %81 = arith.mulf %80, %79 : vector<16x128xf32>
    %82 = arith.addf %77, %81 : vector<16x128xf32>
    %cst_35 = arith.constant 0.797884583 : f32
    %83 = vector.broadcast %cst_35 : f32 to vector<16x128xf32>
    %84 = arith.mulf %83, %82 : vector<16x128xf32>
    %85 = math.tanh %84 : vector<16x128xf32>
    %cst_36 = arith.constant 1.000000e+00 : f32
    %86 = vector.broadcast %cst_36 : f32 to vector<16x128xf32>
    %87 = arith.addf %86, %85 : vector<16x128xf32>
    %cst_37 = arith.constant 5.000000e-01 : f32
    %88 = vector.broadcast %cst_37 : f32 to vector<16x128xf32>
    %89 = arith.mulf %88, %87 : vector<16x128xf32>
    %90 = arith.mulf %77, %89 : vector<16x128xf32>
    %c0_38 = arith.constant 0 : index
    %c0_39 = arith.constant 0 : index
    %c0_40 = arith.constant 0 : index
    %91 = vector.load %arg8[%c0_38, %c0_39, %c0_40] : memref<1x16x128xf32, #tpu.memory_space<vmem>>, vector<1x16x128xf32>
    %92 = vector.shape_cast %91 : vector<1x16x128xf32> to vector<16x128xf32>
    %93 = vector.shape_cast %90 : vector<16x128xf32> to vector<1x16x128xf32>
    tpu.vector_store %arg8[%c0_38, %c0_39, %c0_40], %93 {strides = array<i32>} : memref<1x16x128xf32, #tpu.memory_space<vmem>>, vector<1x16x128xf32>,
    return
  }
  func.func @transform_1(%arg0: i32, %arg1: i32) -> (i32, i32, i32) {
    %c0_i32 = arith.constant 0 : i32
    %c0_i32_0 = arith.constant 0 : i32
    %c0_i32_1 = arith.constant 0 : i32
    return %arg0, %c0_i32, %c0_i32_0 : i32, i32, i32
  }
  func.func @transform_2(%arg0: i32, %arg1: i32) -> (i32, i32, i32) {
    %c0_i32 = arith.constant 0 : i32
    %c0_i32_0 = arith.constant 0 : i32
    %c0_i32_1 = arith.constant 0 : i32
    return %arg1, %c0_i32, %c0_i32_0 : i32, i32, i32
  }
  func.func @transform_3(%arg0: i32, %arg1: i32) -> (i32, i32, i32) {
    %c0_i32 = arith.constant 0 : i32
    %c0_i32_0 = arith.constant 0 : i32
    %c0_i32_1 = arith.constant 0 : i32
    return %arg1, %c0_i32, %c0_i32_0 : i32, i32, i32
  }
  func.func @transform_4(%arg0: i32, %arg1: i32) -> (i32, i32, i32) {
    %c0_i32 = arith.constant 0 : i32
    %c0_i32_0 = arith.constant 0 : i32
    %c0_i32_1 = arith.constant 0 : i32
    return %arg1, %c0_i32, %c0_i32_0 : i32, i32, i32
  }
  func.func @transform_5(%arg0: i32, %arg1: i32) -> (i32, i32, i32) {
    %c0_i32 = arith.constant 0 : i32
    %c0_i32_0 = arith.constant 0 : i32
    %c0_i32_1 = arith.constant 0 : i32
    return %arg1, %c0_i32, %c0_i32_0 : i32, i32, i32
  }
  func.func @transform_6(%arg0: i32, %arg1: i32) -> (i32, i32, i32) {
    %c0_i32 = arith.constant 0 : i32
    %c0_i32_0 = arith.constant 0 : i32
    %c0_i32_1 = arith.constant 0 : i32
    return %arg0, %c0_i32, %c0_i32_0 : i32, i32, i32
  }
  func.func @transform_7(%arg0: i32, %arg1: i32) -> (i32, i32, i32) {
    %c0_i32 = arith.constant 0 : i32
    %c0_i32_0 = arith.constant 0 : i32
    %c0_i32_1 = arith.constant 0 : i32
    return %arg0, %c0_i32, %c0_i32_0 : i32, i32, i32
  }
}

</mosaic_0001>

<bundles_post_ra>
// kernel: tpu_custom_call.1
= control target key start
LH: loop header
LB: loop body
LE: loop exit
PB: predicated region body
PF: predicated region fallthrough
CT: control target
= control target key end

     0   :  { %s1846_s0 = inlined_call_operand.hbm [shape: f32[1,16,128], index: 0, kind: input, shape index: {}]   ;;  %s1847_s1 = inlined_call_operand.vmem [shape: f32[1,2,128], index: 1, kind: input, shape index: {}]   ;;  %s1848_s2 = inlined_call_operand.hbm [shape: f32[3,8,128], index: 2, kind: input, shape index: {}]   ;;  %s1849_s3 = inlined_call_operand.hbm [shape: bf16[3,128,128], index: 3, kind: input, shape index: {}]   ;;  %s1850_s4 = inlined_call_operand.hbm [shape: bf16[3,128,128], index: 4, kind: input, shape index: {}]   ;;  %s1851_s5 = inlined_call_operand.vmem [shape: f32[3,1,128], index: 5, kind: input, shape index: {}]   ;;  %s1852_s6 = inlined_call_operand.hbm [shape: f32[1,16,128], index: 6, kind: output, shape index: {0}]   ;;  %s1853_s7 = inlined_call_operand.hbm [shape: f32[1,2,128], index: 7, kind: output, shape index: {1}]  }
   0x1   :  { %1863 = sst [smem:[#allocation26_spill]] %s1849_s3 }
   0x2   :  { %13 = vsyncpa [#allocation5], 0 }
   0x3   :  { %15 = vsyncpa [#allocation5 + $0x1], 0 }
   0x4   :  { %16 = vsyncpa [#allocation8], 0 }
   0x5   :  { %18 = vsyncpa [#allocation8 + $0x1], 0 }
   0x6   :  { %19 = vsyncpa [#allocation6], 0 }
   0x7   :  { %20 = vsyncpa [#allocation12], 0  ;;  %s1386_s24 = smov 0   ;;  %s1388_s25 = smov 0  }
   0x8   :  { %s1390_s26 = smov 0   ;;  %s1392_s27 = smov 0  }
   0x9   :  { %s1394_s28 = smov 0   ;;  %s1396_s29 = smov 0  }
   0xa LB: > { %1864 = sst [smem:[#allocation22_spill]] %s1320_s26  ;;  %s1415_s30 = sadd.s32 4294967295, %s1332_s29   ;;  %s1332_s29 = sphi %s1396_s29, %s26_s29   ;;  %s1328_s28 = sphi %s1394_s28, %s1882_s28   ;;  %s1324_s27 = sphi %s1392_s27, %s1881_s27   ;;  %s1320_s26 = sphi %s1390_s26, %s1880_s26   ;;  %s1316_s25 = sphi %s1388_s25, %s1884_s25   ;;  %s1312_s24 = sphi %s1386_s24, %s1883_s24  }
   0xb   : > { %1865 = sst [smem:[#allocation23_spill]] %s1328_s28  ;;  %s35_s8 = sadd.s32 1, %s1328_s28 }
   0xc   : > { %p36_p0 = scmp.ge.s32.totalorder %s35_s8, 3  ;;  %s71_s9 = sadd.s32 1, %s1320_s26 }
   0xd   : > { %p78_p1 = scmp.ne.s32.totalorder %s1320_s26, %s1316_s25  ;;  %p79_p2 = scmp.eq.s32.totalorder %s1332_s29, 0 }
   0xe   : > { %s1886_s8 = smov (%p36_p0, %s35_s8), 0  ;;  %p84_p4 = scmp.ne.s32.totalorder %s1316_s25, %s1312_s24 }
   0xf   : > { %1866 = sst [smem:[#allocation24_spill]] %s1886_s8  ;;  %p80_p3 = por %p79_p2, %p78_p1 }
  0x10   : > { %s68_s10 = ssub.s32 %s1328_s28, %s1886_s8  ;;  %p85_p5 = scmp.eq.s32.totalorder %s1415_s30, 0 }
  0x11   : > { %p69_p6 = scmp.eq.s32.totalorder %s68_s10, 0  ;;  %p1035_p8 = scmp.lt.s32.totalorder %s1332_s29, 3 }
  0x12   : > { %p1428_p7 = por %p85_p5, %p84_p4  ;;  %s1437_s13 = sand.u32 1, %s1320_s26  }
  0x13   : > { %s1434_s12 = scalar_select %p69_p6, %s1320_s26, %s71_s9  }
  0x14   : > { %s1867_s11 = scalar_select %p1428_p7, 1, 0 }
  0x15   : > { %1868 = sst [smem:[#allocation25_spill]] %s1434_s12  ;;  %p1439_p9 = pnand %p1035_p8, %p80_p3 }
  0x16   : > { %s263_s15 = sand.u32 1, %s1332_s29   ;;  %s1854_s16 = sshll.u32 %s1437_s13, 6 }
  0x17   : > { %s1869_s14 = scalar_select %p1439_p9, 1, 0 }
  0x18   : > { %s949_s17 = sshll.u32 %s1328_s28, 10  ;;  %s1870_s3 = sld [smem:[#allocation26_spill]] }
  0x19   : > { %s267_s21 = scalar_lea.vmem [#allocation7], %s1854_s16  ;;  %s1457_s23 = scalar_lea.sflag [#allocation8], %s263_s15 }
  0x1a   : > { %s274_s22 = sshll.u32 %s267_s21, 4  ;;  %p1463_p11 = pneg %p1439_p9  ;;  %s1455_s22 = int_to_ptr.vmem [resolvable:$true] %s274_s22 }
  0x1e   : > { %s1451_s20 = scalar_lea.hbm %s1870_s3, %s949_s17  ;;  %s1107_s19 = scalar_lea.hbm %s1870_s3, 3072 }
  0x1f   : > { %s1102_s24 = scalar_lea.hbm %s1451_s20, 1024  ;;  %p1108_p0 = scmp.lt.u32.totalorder %s1451_s20, %s1870_s3 }
  0x20   : > { %p1103_p10 = scmp.ne.s32.totalorder %s1451_s20, %s1102_s24  ;;  %p1109_p1 = scmp.lt.u32.totalorder %s1107_s19, %s1102_s24 }
  0x21   : > { %p1111_p3 = scmp.lt.u32.totalorder %s1102_s24, %s1451_s20 }
  0x22   : > { %p1105_p12 = pnand %p1463_p11, %p1103_p10  ;;  %p1110_p2 = por %p1109_p1, %p1108_p0 }
  0x24   : > { %p1106_p13 = pneg %p1105_p12  ;;  %p1112_p4 = por %p1111_p3, %p1110_p2 }
  0x26   : > { %p1113_p5 = pnand %p1112_p4, %p1106_p13 }
  0x28   : > { %1116 = shalt.err (!%p1113_p5)
}
  0x29   : > { %s1117_s15 = scalar_lea.vmem %s1455_s22, 1024  ;;  %s1334_s10 = smov [#allocation7]  }
  0x2a   : > { %p1118_p6 = scmp.ne.s32.totalorder %s1455_s22, %s1117_s15  ;;  %s1122_s18 = sshll.u32 %s1334_s10, 4  ;;  %s1123_s18 = int_to_ptr.vmem [resolvable:$false] %s1122_s18 }
  0x2b   : > { %s1124_s16 = scalar_lea.vmem %s1123_s18, 2048  ;;  %p1125_p12 = scmp.lt.s32.totalorder %s1455_s22, %s1123_s18 }
  0x2c   : > { %p1120_p8 = pnand %p1118_p6, %p1463_p11  ;;  %p1126_p7 = scmp.lt.s32.totalorder %s1124_s16, %s1117_s15 }
  0x2e   : > { %p1121_p10 = pneg %p1120_p8  ;;  %p1127_p0 = por %p1126_p7, %p1125_p12 }
  0x30   : > { %p1128_p1 = pnand %p1127_p0, %p1121_p10 }
  0x32   : > { %1131 = shalt.err (!%p1128_p1)
}
  0x33   : > { %s1857_s24 = smov 64   ;;  %s1858_s19 = smov 4  }
  0x34   : > { %1031 = dma.hbm_to_vmem [thread:$0]  (!%p1439_p9), %s1451_s20, 1024, %s1455_s22, %s1457_s23, %s1857_s24, %s1857_s24, %s1858_s19  }
  0x35   : > { %s1495_s10 = scalar_lea.hbm %s1850_s4, %s949_s17  ;;  %s1872_s18 = sshll.u32 %s1437_s13, 6 }
  0x36   : > { %s288_s16 = scalar_lea.vmem [#allocation9], %s1872_s18  ;;  %p917_p7 = scmp.ge.s32.totalorder %s1332_s29, 1 }
  0x37   : > { %s295_s3 = sshll.u32 %s288_s16, 4  ;;  %p309_p13 = scmp.lt.s32.totalorder %s1332_s29, 4  ;;  %s1499_s3 = int_to_ptr.vmem [resolvable:$true] %s295_s3 }
  0x38   : > { %s909_s12 = sshll.u32 %s1437_s13, 3  ;;  %s910_s20 = sshll.u32 %s1328_s28, 7 }
  0x39   : > { %p1503_p2 = pnand %p917_p7, %p309_p13  ;;  %s1512_s21 = scalar_lea.hbm %s1848_s2, %s910_s20 }
  0x3a   : > { %s249_s17 = scalar_lea.vmem [#allocation4], %s909_s12  ;;  %s246_s18 = scalar_lea.sflag [#allocation5], %s1437_s13 }
  0x3b   : > { %s1873_s8 = scalar_select %p1503_p2, 1, 0 }
  0x3c   : > { %s256_s15 = sshll.u32 %s249_s17, 4  ;;  %s1132_s16 = scalar_lea.hbm %s1512_s21, 128  ;;  %s257_s15 = int_to_ptr.vmem [resolvable:$true] %s256_s15 }
  0x3d   : > { %p1133_p3 = scmp.ne.s32.totalorder %s1512_s21, %s1132_s16  ;;  %s1137_s26 = scalar_lea.hbm %s1848_s2, 384 }
  0x3e   : > { %p1138_p6 = scmp.lt.u32.totalorder %s1512_s21, %s1848_s2  ;;  %p1139_p8 = scmp.lt.u32.totalorder %s1137_s26, %s1132_s16 }
  0x3f   : > { %p1135_p4 = pnand %p1133_p3, %p1463_p11  ;;  %p1141_p12 = scmp.lt.u32.totalorder %s1132_s16, %s1512_s21 }
  0x40   : > { %p1140_p10 = por %p1139_p8, %p1138_p6 }
  0x41   : > { %p1136_p5 = pneg %p1135_p4 }
  0x42   : > { %p1142_p0 = por %p1141_p12, %p1140_p10 }
  0x44   : > { %p1143_p1 = pnand %p1142_p0, %p1136_p5 }
  0x46   : > { %1146 = shalt.err (!%p1143_p1)
}
  0x47   : > { %s1147_s12 = scalar_lea.vmem %s257_s15, 128  ;;  %s1337_s13 = smov [#allocation4]  }
  0x48   : > { %p1148_p7 = scmp.ne.s32.totalorder %s257_s15, %s1147_s12  ;;  %s1152_s22 = sshll.u32 %s1337_s13, 4  ;;  %s1153_s22 = int_to_ptr.vmem [resolvable:$false] %s1152_s22 }
  0x49   : > { %s1154_s28 = scalar_lea.vmem %s1153_s22, 256  ;;  %p1155_p4 = scmp.lt.s32.totalorder %s257_s15, %s1153_s22 }
  0x4a   : > { %p1150_p13 = pnand %p1148_p7, %p1463_p11  ;;  %p1156_p2 = scmp.lt.s32.totalorder %s1154_s28, %s1147_s12 }
  0x4c   : > { %p1151_p3 = pneg %p1150_p13  ;;  %p1157_p9 = por %p1156_p2, %p1155_p4 }
  0x4e   : > { %p1158_p6 = pnand %p1157_p9, %p1151_p3 }
  0x50   : > { %1161 = shalt.err (!%p1158_p6)
}
  0x51   : > { %p1874_p8 = scmp.ne.s32.totalorder %s1869_s14, 0  ;;  %s1162_s26 = scalar_lea.hbm %s1495_s10, 1024 }
  0x52   : > { %p1163_p5 = scmp.ne.s32.totalorder %s1495_s10, %s1162_s26  ;;  %s1167_s16 = scalar_lea.hbm %s1850_s4, 3072 }
  0x53   : > { %1028 = dma.hbm_to_vmem [thread:$0]  (!%p1874_p8), %s1512_s21, 128, %s257_s15, %s246_s18  }
  0x54   : > { %p1165_p10 = pnand %p1163_p5, %p1463_p11  ;;  %p1168_p9 = scmp.lt.u32.totalorder %s1495_s10, %s1850_s4 }
  0x55   : > { %p1169_p2 = scmp.lt.u32.totalorder %s1167_s16, %s1162_s26  ;;  %p1171_p1 = scmp.lt.u32.totalorder %s1162_s26, %s1495_s10 }
  0x56   : > { %p1166_p12 = pneg %p1165_p10 }
  0x57   : > { %p1170_p0 = por %p1169_p2, %p1168_p9 }
  0x59   : > { %p1172_p7 = por %p1171_p1, %p1170_p0 }
  0x5b   : > { %p1173_p13 = pnand %p1172_p7, %p1166_p12 }
  0x5d   : > { %1176 = shalt.err (!%p1173_p13)
}
  0x5e   : > { %s1177_s21 = scalar_lea.vmem %s1499_s3, 1024  ;;  %s1338_s15 = smov [#allocation9]  }
  0x5f   : > { %p1178_p3 = scmp.ne.s32.totalorder %s1499_s3, %s1177_s21  ;;  %s1182_s18 = sshll.u32 %s1338_s15, 4  ;;  %s1183_s18 = int_to_ptr.vmem [resolvable:$false] %s1182_s18 }
  0x60   : > { %s1184_s12 = scalar_lea.vmem %s1183_s18, 2048  ;;  %p1185_p5 = scmp.lt.s32.totalorder %s1499_s3, %s1183_s18 }
  0x61   : > { %p1180_p4 = pnand %p1178_p3, %p1463_p11  ;;  %p1186_p10 = scmp.lt.s32.totalorder %s1184_s12, %s1177_s21 }
  0x63   : > { %p1181_p6 = pneg %p1180_p4  ;;  %p1187_p9 = por %p1186_p10, %p1185_p5 }
  0x65   : > { %p1188_p2 = pnand %p1187_p9, %p1181_p6 }
  0x67   : > { %1191 = shalt.err (!%p1188_p2)
}
  0x68   : > { %s1875_s13 = smov 4   ;;  %s1876_s22 = smov 64  }
  0x69   : > { %1034 = dma.hbm_to_vmem [thread:$0]  (!%p1874_p8), %s1495_s10, 1024, %s1499_s3, %s1457_s23, %s1876_s22, %s1876_s22, %s1875_s13  }
  0x6a   : > { %p1877_p11 = scmp.ne.s32.totalorder %s1873_s8, 0 }
  0x6b   : > { %s315_s9 = sand.u32 (!%p1877_p11), 1, %s1316_s25   ;;  %p1878_p12 = scmp.ne.s32.totalorder (!%p1877_p11), %s1867_s11, 0 }
  0x6c   : > { %313 = sbr.rel (%p1877_p11) target bundleno = 686 (0x2ae), region = 40  ;;  %s918_s28 = sshll.u32 (!%p1877_p11), %s315_s9, 3 }
  0x6d   : > { %s316_s26 = scalar_lea.sflag (!%p1877_p11), [#allocation5], %s315_s9  ;;  %s1560_s19 = scalar_lea.vmem (!%p1877_p11), [#allocation4], %s918_s28 }
  0x73   : > { %1291 = dma.done.wait (%p1878_p12), %s316_s26, 128  }
  0x74   : > { %1293 = vsyncadd (%p1878_p12), %s316_s26, 4294967168  ;;  %s324_s14 = sand.u32 1, %s1415_s30   ;;  %s919_s17 = sshll.u32 %s315_s9, 6 }
  0x75   : > { %s325_s3 = scalar_lea.sflag [#allocation8], %s324_s14  ;;  %s1567_s23 = scalar_lea.vmem [#allocation7], %s919_s17 }
  0x76   : > { %1295 = dma.done.wait (%p1878_p12), %s325_s3, 2048  }
  0x77   : > { %1297 = vsyncadd (%p1878_p12), %s325_s3, 4294965248  ;;  %p382_p8 = scmp.lt.s32.totalorder %s1324_s27, 2  ;;  %s1581_s20 = scalar_lea.vmem [#allocation9], %s919_s17 }
  0x78   : > { %p921_p0 = scmp.ne.s32.totalorder %s1324_s27, 0 }
  0x79   : > { %s1575_s8 = scalar_select %p382_p8, %s1324_s27, 2 }
  0x7a   : > { %389 = sbr.rel (%p921_p0) target bundleno = 139 (0x8b), region = 56  ;;  %v404_v0 = vld [vmem:[%s1847_s1] sm:$0x3] (!%p921_p0)  ;;  %s1339_s11 = smov (!%p921_p0), [#allocation10]  }
  0x7b   : > { %s384_s24 = scalar_lea.vmem %s1851_s5, %s1575_s8  ;;  %s400_s18 = sshll.u32 (!%p921_p0), %s1339_s11, 4  ;;  %405 = vst [vmem:[#allocation11] sm:$0x3] (!%p921_p0), %v404_v0  ;;  %s401_s18 = int_to_ptr.vmem [resolvable:$true] %s400_s18 }
  0x7c   : > { %s1192_s22 = scalar_lea.hbm (!%p921_p0), %s1846_s0, 256 }
  0x7d   : > { %p1193_p1 = scmp.ne.s32.totalorder (!%p921_p0), %s1846_s0, %s1192_s22  ;;  %p1196_p7 = scmp.lt.u32.totalorder (!%p921_p0), %s1192_s22, %s1846_s0 }
  0x7f   : > { %p1198_p13 = pnand (!%p921_p0), %p1196_p7, %p1193_p1 }
  0x81   : > { %1201 = shalt.err (!%p1198_p13)  }
  0x82   : > { %s1202_s17 = scalar_lea.vmem %s401_s18, 256  ;;  %p1207_p4 = scmp.lt.s32.totalorder %s401_s18, %s401_s18 }
  0x83   : > { %p1203_p3 = scmp.ne.s32.totalorder %s401_s18, %s1202_s17  ;;  %p1208_p6 = scmp.lt.s32.totalorder %s1202_s17, %s1202_s17 }
  0x85   : > { %p1209_p5 = por %p1208_p6, %p1207_p4 }
  0x87   : > { %p1210_p10 = pnand %p1209_p5, %p1203_p3 }
  0x89   : > { %1213 = shalt.err (!%p1210_p10)  }
  0x8a   : > { %403 = dma.hbm_to_vmem [thread:$0]  %s1846_s0, 256, %s401_s18, [#allocation3] }
  0x8b PF: > { %v407_v1 = vld [vmem:[%s1567_s23] sm:$0xf]  ;;  %v408_v2 = vld [vmem:[%s1567_s23 + $0x4] sm:$0xf]  ;;  %v1602_v3 = vld [vmem:[%s1567_s23 + $0x8] sm:$0xf]  ;;  %v440_v24 = vlaneseq }
  0x8c   : > { %v1605_v4 = vld [vmem:[%s1567_s23 + $0xc] sm:$0xf]  ;;  %v1608_v5 = vld [vmem:[%s1567_s23 + $0x10] sm:$0xf]  ;;  %v1611_v6 = vld [vmem:[%s1567_s23 + $0x14] sm:$0xf]  ;;  %v925_v49 = vcombine.low %v407_v1, %v408_v2 }
  0x8d   : > { %v1614_v7 = vld [vmem:[%s1567_s23 + $0x18] sm:$0xf]  ;;  %v1617_v8 = vld [vmem:[%s1567_s23 + $0x1c] sm:$0xf]  ;;  %v1620_v9 = vld [vmem:[%s1567_s23 + $0x20] sm:$0xf] }
  0x8e   : > { %v1623_v10 = vld [vmem:[%s1567_s23 + $0x24] sm:$0xf]  ;;  %v1626_v11 = vld [vmem:[%s1567_s23 + $0x28] sm:$0xf]  ;;  %v1629_v12 = vld [vmem:[%s1567_s23 + $0x2c] sm:$0xf] }
  0x8f   : > { %v1632_v13 = vld [vmem:[%s1567_s23 + $0x30] sm:$0xf]  ;;  %v1635_v14 = vld [vmem:[%s1567_s23 + $0x34] sm:$0xf]  ;;  %v1638_v15 = vld [vmem:[%s1567_s23 + $0x38] sm:$0xf] }
  0x90   : > { %v1641_v16 = vld [vmem:[%s1567_s23 + $0x3c] sm:$0xf]  ;;  %v423_v17 = vld [vmem:[%s1581_s20] sm:$0xf]  ;;  %v424_v18 = vld [vmem:[%s1581_s20 + $0x4] sm:$0xf] }
  0x91   : > { %v425_v19 = vld [vmem:[%s1581_s20 + $0x8] sm:$0xf]  ;;  %v426_v20 = vld [vmem:[%s1581_s20 + $0xc] sm:$0xf]  ;;  %v1648_v21 = vld [vmem:[%s1581_s20 + $0x10] sm:$0xf] }
  0x92   : > { %v1651_v22 = vld [vmem:[%s1581_s20 + $0x14] sm:$0xf]  ;;  %v1654_v23 = vld [vmem:[%s1581_s20 + $0x18] sm:$0xf]  ;;  %v1657_v25 = vld [vmem:[%s1581_s20 + $0x1c] sm:$0xf] }
  0x93   : > { %v1660_v26 = vld [vmem:[%s1581_s20 + $0x20] sm:$0xf]  ;;  %v1663_v27 = vld [vmem:[%s1581_s20 + $0x24] sm:$0xf]  ;;  %v1666_v28 = vld [vmem:[%s1581_s20 + $0x28] sm:$0xf] }
  0x94   : > { %v1669_v29 = vld [vmem:[%s1581_s20 + $0x2c] sm:$0xf]  ;;  %v1672_v30 = vld [vmem:[%s1581_s20 + $0x30] sm:$0xf]  ;;  %v1675_v31 = vld [vmem:[%s1581_s20 + $0x34] sm:$0xf] }
  0x95   : > { %v1678_v32 = vld [vmem:[%s1581_s20 + $0x38] sm:$0xf]  ;;  %v1681_v33 = vld [vmem:[%s1581_s20 + $0x3c] sm:$0xf]  ;;  %v1688_v34 = vld [vmem:[%s384_s24] ss:$0 sm:$0xff] }
  0x96   : > { %v1690_v35 = vshrl.u32 %v440_v24, 7  ;;  %p1036_p9 = scmp.eq.s32.totalorder %s1324_s27, 0  ;;  %v406_v36 = vld [vmem:[%s1560_s19] sm:$0xff]  ;;  %v1340_v39 = vmov 0.0  }
  0x97   : > { %969 = vmatprep.subr.bf16.mxu0 %v1340_v39 }
  0x98   : > { %vm443_vm0 = vcmp.ge.s32.totalorder %v1690_v35, 2  ;;  %v451_v37 = vsub.s32 0, %v1690_v35  ;;  %vm455_vm1 = vcmp.ge.s32.totalorder %v1690_v35, 4  ;;  %v463_v38 = vsub.s32 1, %v1690_v35 }
  0x99   : > { %v922_v40 = vsel %vm443_vm0, 1.0, %v1340_v39  ;;  %v923_v41 = vsel %vm455_vm1, 1.0, %v1340_v39  ;;  %v475_v42 = vsub.s32 3, %v1690_v35 }
  0x9a   : > { %v1701_v43 = vrot.slane %v406_v36, %v451_v37  ;;  %v1703_v44 = vrot.slane %v406_v36, %v463_v38 }
  0x9b   : > { %v1705_v45 = vrot.slane %v406_v36, %v475_v42 }
  0x9c   : > { %v1708_v46 = vmul.f32 %v922_v40, %v1701_v43  ;;  %v1711_v47 = vmul.f32 %v923_v41, %v1703_v44 }
  0x9d   : > { %v1714_v48 = vmul.f32 0.0, %v1705_v45 }
  0x9e   : > { %1299 = dma.done.wait (%p1036_p9), [#allocation3], 256 }
  0x9f   : > { %1301 = vsyncadd (%p1036_p9), [#allocation3], 4294967040  ;;  %989 = vmatprep.subr.bf16.mxu1 %v1340_v39  ;;  %970 = vmatpush3.bf16.msra.mxu0 %v925_v49  ;;  %v926_v50 = vcombine.low %v1602_v3, %v1605_v4  ;;  %v934_v51 = vcombine.low %v423_v17, %v424_v18  ;;  %vm1341_vm2 = vmmov 0   ;;  %v935_v52 = vcombine.low %v425_v19, %v426_v20  ;;  %v1746_v59 = vld [vmem:[#allocation10] sm:$0xff]  ;;  %v1748_v60 = vld [vmem:[#allocation10 + $0x8] sm:$0xff]  ;;  %p1037_p2 = scmp.eq.s32.totalorder %s1415_s30, 2 }
  0xa0   : > { %971 = vmatprep.subr.bf16.mxu0 %v1340_v39  ;;  %985 = vmatprep.mubr.msk.bf16.mxu0 %vm1341_vm2, %v1340_v39  ;;  %v927_v53 = vcombine.low %v1608_v5, %v1611_v6  ;;  %v928_v54 = vcombine.low %v1614_v7, %v1617_v8  ;;  %v929_v55 = vcombine.low %v1620_v9, %v1623_v10  ;;  %v579_v4 = vld [vmem:[#allocation11] sm:$0x3]  ;;  %vm584_vm3 = vcmask 1041408   ;;  %s1342_s27 = smov [#allocation11]  }
  0xa1   : > { %990 = vmatpush3.bf16.msra.mxu1 %v934_v51  ;;  %1005 = vmatprep.mubr.msk.bf16.mxu1 %vm1341_vm2, %v1340_v39  ;;  %v930_v56 = vcombine.low %v1626_v11, %v1629_v12  ;;  %v931_v57 = vcombine.low %v1632_v13, %v1635_v14  ;;  %v932_v58 = vcombine.low %v1638_v15, %v1641_v16  ;;  %vm588_vm4 = vcmp.lt.s32.totalorder %v1690_v35, 2  ;;  %s756_s19 = sshll.u32 %s1342_s27, 4  ;;  %s757_s19 = int_to_ptr.vmem [resolvable:$true] %s756_s19 }
  0xa2   : > { %991 = vmatprep.subr.bf16.mxu1 %v1340_v39  ;;  %v487_v61 = vpack.c.bf16 %v1748_v60, %v1746_v59  ;;  %v936_v62 = vcombine.low %v1648_v21, %v1651_v22  ;;  %v937_v63 = vcombine.low %v1654_v23, %v1657_v25  ;;  %v938_v0 = vcombine.low %v1660_v26, %v1663_v27  ;;  %s1214_s8 = scalar_lea.vmem %s757_s19, 32  ;;  %p1221_p0 = scmp.lt.s32.totalorder %s757_s19, %s757_s19 }
  0xa3   : > { %972 = vmatpush3.bf16.msra.mxu0 %v926_v50  ;;  %v939_v1 = vcombine.low %v1666_v28, %v1669_v29  ;;  %v940_v2 = vcombine.low %v1672_v30, %v1675_v31  ;;  %v941_v3 = vcombine.low %v1678_v32, %v1681_v33  ;;  %v582_v5 = vmul.f32 %v579_v4, %v1701_v43  ;;  %p1215_p11 = scmp.ne.s32.totalorder %s757_s19, %s1214_s8  ;;  %p1222_p1 = scmp.lt.s32.totalorder %s1214_s8, %s1214_s8 }
  0xa4   : > { %973 = vmatprep.subr.bf16.mxu0 %v1340_v39  ;;  %vm597_vm5 = vcmp.lt.s32.totalorder %v1690_v35, 4 }
  0xa5   : > { %992 = vmatpush3.bf16.msra.mxu1 %v935_v52  ;;  %p1216_p12 = pnand %p1215_p11, %p1037_p2  ;;  %p1223_p7 = por %p1222_p1, %p1221_p0 }
  0xa6   : > { %993 = vmatprep.subr.bf16.mxu1 %v1340_v39 }
  0xa7   : > { %974 = vmatpush3.bf16.msra.mxu0 %v927_v53  ;;  %p1217_p8 = pneg %p1216_p12 }
  0xa8   : > { %975 = vmatprep.subr.bf16.mxu0 %v1340_v39 }
  0xa9   : > { %994 = vmatpush3.bf16.msra.mxu1 %v936_v62  ;;  %p1224_p13 = pnand %p1223_p7, %p1217_p8 }
  0xaa   : > { %995 = vmatprep.subr.bf16.mxu1 %v1340_v39 }
  0xab   : > { %976 = vmatpush3.bf16.msra.mxu0 %v928_v54 }
  0xac   : > { %977 = vmatprep.subr.bf16.mxu0 %v1340_v39 }
  0xad   : > { %996 = vmatpush3.bf16.msra.mxu1 %v937_v63 }
  0xae   : > { %997 = vmatprep.subr.bf16.mxu1 %v1340_v39 }
  0xaf   : > { %978 = vmatpush3.bf16.msra.mxu0 %v929_v55 }
  0xb0   : > { %979 = vmatprep.subr.bf16.mxu0 %v1340_v39 }
  0xb1   : > { %998 = vmatpush3.bf16.msra.mxu1 %v938_v0 }
  0xb2   : > { %999 = vmatprep.subr.bf16.mxu1 %v1340_v39 }
  0xb3   : > { %980 = vmatpush3.bf16.msra.mxu0 %v930_v56 }
  0xb4   : > { %981 = vmatprep.subr.bf16.mxu0 %v1340_v39 }
  0xb5   : > { %1000 = vmatpush3.bf16.msra.mxu1 %v939_v1 }
  0xb6   : > { %1001 = vmatprep.subr.bf16.mxu1 %v1340_v39 }
  0xb7   : > { %982 = vmatpush3.bf16.msra.mxu0 %v931_v57 }
  0xb8   : > { %983 = vmatprep.subr.bf16.mxu0 %v1340_v39 }
  0xb9   : > { %1002 = vmatpush3.bf16.msra.mxu1 %v940_v2 }
  0xba   : > { %1003 = vmatprep.subr.bf16.mxu1 %v1340_v39 }
  0xbb   : > { %984 = vmatpush3.bf16.msra.mxu0 %v932_v58 }
  0xbd   : > { %1004 = vmatpush3.bf16.msra.mxu1 %v941_v3 }
  0xbe   : > { %986 = vmatmul.mubr.bf16.vlgmr.msra.gmra.mrb[0].mxu0 %v487_v61 }
 0x191   : > { %v570_v6 = vpop.f32.mrb[0].mxu0 }
 0x192   : > { %v583_v7 = vadd.f32 %v582_v5, %v570_v6  ;;  %v987_v8 = vpop.f32.mrb[1].mxu0 }
 0x193   : > { %v573_v9 = vpop.f32.mrb[2].mxu0 }
 0x194   : > { %v585_v10 = vsel %vm584_vm3, %v583_v7, %v570_v6  ;;  %v587_v11 = vrot.slane %v573_v9, 6  ;;  %v988_v12 = vpop.f32.mrb[3].mxu0 }
 0x195   : > { %v586_v13 = vrot.slane %v585_v10, 6 }
 0x197   : > { %v589_v14 = vsel %vm588_vm4, %v586_v13, %v587_v11  ;;  %v590_v15 = vsel %vm588_vm4, %v587_v11, %v586_v13 }
 0x198   : > { %v591_v16 = vmul.f32 %v590_v15, %v1708_v46  ;;  %v592_v17 = vmul.f32 %v589_v14, %v1701_v43 }
 0x19a   : > { %v593_v18 = vadd.f32 %v591_v16, %v585_v10  ;;  %v594_v19 = vadd.f32 %v592_v17, %v573_v9 }
 0x19c   : > { %v595_v20 = vrot.slane %v593_v18, 4  ;;  %v596_v21 = vrot.slane %v594_v19, 4 }
 0x19e   : > { %v598_v22 = vsel %vm597_vm5, %v595_v20, %v596_v21  ;;  %v599_v23 = vsel %vm597_vm5, %v596_v21, %v595_v20 }
 0x19f   : > { %v600_v24 = vmul.f32 %v599_v23, %v1711_v47  ;;  %v601_v25 = vmul.f32 %v598_v22, %v1703_v44 }
 0x1a1   : > { %v602_v26 = vadd.f32 %v600_v24, %v593_v18  ;;  %v603_v27 = vadd.f32 %v601_v25, %v594_v19 }
 0x1a3   : > { %v604_v28 = vmul.f32 %v603_v27, %v1714_v48  ;;  %v605_v29 = vmul.f32 %v602_v26, %v1705_v45 }
 0x1a5   : > { %v607_v30 = vadd.f32 %v605_v29, %v603_v27  ;;  %v606_v31 = vadd.f32 %v604_v28, %v602_v26 }
 0x1a7   : > { %610 = vst [vmem:[#allocation11 - $0x6] sm:$0xc0] %v607_v30  ;;  %v613_v32 = vpack.c.bf16 %v607_v30, %v606_v31 }
 0x1a9   : > { %1006 = vmatmul.mubr.bf16.vlgmr.msra.gmra.mrb[0].mxu1 %v613_v32 }
 0x1aa   : > { %1227 = shalt.err (!%p1224_p13)
}
 0x1ab   : > { %s1228_s21 = scalar_lea.hbm %s1853_s7, 32 }
 0x1ac   : > { %p1229_p3 = scmp.ne.s32.totalorder %s1853_s7, %s1228_s21  ;;  %p1234_p5 = scmp.lt.u32.totalorder %s1228_s21, %s1853_s7 }
 0x1ae   : > { %p1230_p4 = pnand %p1229_p3, %p1037_p2 }
 0x1b0   : > { %p1231_p6 = pneg %p1230_p4 }
 0x1b2   : > { %p1236_p10 = pnand %p1234_p5, %p1231_p6 }
 0x1b4   : > { %1239 = shalt.err (!%p1236_p10)
}
 0x1b5   : > { %1020 = dma.vmem_to_hbm [thread:$0]  (%p1037_p2), %s757_s19, 32, %s1853_s7, [#allocation12]   ;;  %v620_v33 = vmul.f32 %v1688_v34, %v1746_v59  ;;  %v621_v35 = vmul.f32 %v1688_v34, %v1748_v60 }
 0x1b6   : > { %s1343_s9 = smov [#allocation10]  }
 0x1b7   : > { %s740_s28 = sshll.u32 %s1343_s9, 4  ;;  %s741_s28 = int_to_ptr.vmem [resolvable:$true] %s740_s28 }
 0x1b8   : > { %s1240_s26 = scalar_lea.vmem %s741_s28, 256  ;;  %p1247_p8 = scmp.lt.s32.totalorder %s741_s28, %s741_s28 }
 0x1b9   : > { %p1241_p9 = scmp.ne.s32.totalorder %s741_s28, %s1240_s26  ;;  %p1248_p0 = scmp.lt.s32.totalorder %s1240_s26, %s1240_s26 }
 0x1bb   : > { %p1242_p11 = pnand %p1241_p9, %p1037_p2  ;;  %p1249_p1 = por %p1248_p0, %p1247_p8 }
 0x1bd   : > { %p1243_p12 = pneg %p1242_p11 }
 0x1bf   : > { %p1250_p7 = pnand %p1249_p1, %p1243_p12 }
 0x27c   : > { %v704_v36 = vpop.f32.mrb[0].mxu1 }
 0x27d   : > { %v705_v37 = vadd.f32 %v704_v36, %v620_v33  ;;  %v1007_v38 = vpop.f32.mrb[1].mxu1 }
 0x27e   : > { %v707_v39 = vpop.f32.mrb[2].mxu1 }
 0x27f   : > { %v711_v40 = vmul.f32 %v705_v37, %v705_v37  ;;  %v708_v41 = vadd.f32 %v707_v39, %v621_v35  ;;  %v1008_v42 = vpop.f32.mrb[3].mxu1 }
 0x281   : > { %v713_v43 = vmul.f32 %v711_v40, %v705_v37  ;;  %v712_v44 = vmul.f32 %v708_v41, %v708_v41 }
 0x283   : > { %v715_v45 = vmul.f32 0.044715, %v713_v43  ;;  %v714_v46 = vmul.f32 %v712_v44, %v708_v41 }
 0x285   : > { %v717_v47 = vadd.f32 %v715_v45, %v705_v37  ;;  %v716_v48 = vmul.f32 0.044715, %v714_v46 }
 0x287   : > { %v719_v49 = vmul.f32 0.7978846, %v717_v47  ;;  %v718_v50 = vadd.f32 %v716_v48, %v708_v41 }
 0x289   : > { %1098 = vtanh.f32 %v719_v49  ;;  %v720_v51 = vmul.f32 0.7978846, %v718_v50 }
 0x28b   : > { %1100 = vtanh.f32 %v720_v51 }
 0x293   : > { %v1099_v34 = vpop.eup %1098 }
 0x294   : > { %v723_v52 = vadd.f32 1.0, %v1099_v34 }
 0x295   : > { %v1101_v53 = vpop.eup %1100 }
 0x296   : > { %v725_v54 = vmul.f32 0.5, %v723_v52  ;;  %v724_v55 = vadd.f32 1.0, %v1101_v53 }
 0x298   : > { %v727_v56 = vmul.f32 %v725_v54, %v705_v37  ;;  %v726_v57 = vmul.f32 0.5, %v724_v55 }
 0x29a   : > { %729 = vst [vmem:[#allocation10] sm:$0xff] %v727_v56  ;;  %v728_v58 = vmul.f32 %v726_v57, %v708_v41 }
 0x29c   : > { %730 = vst [vmem:[#allocation10 + $0x8] sm:$0xff] %v728_v58 }
 0x29d   : > { %1253 = shalt.err (!%p1250_p7)
}
 0x29e   : > { %s1254_s3 = scalar_lea.hbm %s1852_s6, 256 }
 0x29f   : > { %p1255_p13 = scmp.ne.s32.totalorder %s1852_s6, %s1254_s3  ;;  %p1260_p6 = scmp.lt.u32.totalorder %s1254_s3, %s1852_s6 }
 0x2a1   : > { %p1256_p3 = pnand %p1255_p13, %p1037_p2 }
 0x2a3   : > { %p1257_p4 = pneg %p1256_p3 }
 0x2a5   : > { %p1262_p5 = pnand %p1260_p6, %p1257_p4 }
 0x2a7   : > { %1265 = shalt.err (!%p1262_p5)
}
 0x2a8   : > { %s1344_s19 = smov 128   ;;  %s1345_s8 = smov 8  }
 0x2a9   : > { %1018 = dma.vmem_to_hbm [thread:$0]  (%p1037_p2), %s741_s28, 256, %s1852_s6, [#allocation6], %s1344_s19, %s1344_s19, %s1345_s8  }
 0x2aa   : > { %1303 = dma.done.wait (%p1037_p2), [#allocation6], 256  }
 0x2ab   : > { %1305 = vsyncadd (%p1037_p2), [#allocation6], 4294967040 }
 0x2ac   : > { %1307 = dma.done.wait (%p1037_p2), [#allocation12], 32  }
 0x2ad   : > { %1309 = vsyncadd (%p1037_p2), [#allocation12], 4294967264 }
 0x2ae PF: > { %s26_s29 = sadd.s32 1, %s1332_s29   ;;  %s1879_s21 = sld [smem:[#allocation22_spill]] }
 0x2af   : > { %p23_p10 = scmp.ge.s32.totalorder %s26_s29, 5   ;;  %s1880_s26 = sld [smem:[#allocation25_spill]] }
 0x2b0   : > { %s1881_s27 = sld [smem:[#allocation23_spill]]  ;;  %s1882_s28 = sld [smem:[#allocation24_spill]] }
 0x2b1   : > { %s1883_s24 = smov %s1316_s25  ;;  %25 = sbr.rel (!%p23_p10) target bundleno = 10 (0xa), region = 130 }
 0x2b4   : > { %s1884_s25 = smov %s1879_s21 }
 0x2b8   :  { %773 = vsyncpa [#allocation5], 1 }
 0x2b9   :  { %775 = vsyncpa [#allocation5 + $0x1], 1 }
 0x2ba   :  { %776 = vsyncpa [#allocation8], 1 }
 0x2bb   :  { %778 = vsyncpa [#allocation8 + $0x1], 1 }
 0x2bc   :  { %779 = vsyncpa [#allocation6], 1 }
 0x2bd   :  { %781 = vsyncpa [#allocation6 + $0x1], 1 }
 0x2be   :  { %782 = vsyncpa [#allocation12], 1 }
 0x2bf   :  { %783 = vsyncmov [#allocation3] }
 0x2c2   :  { %s784_s30 = vpop.sfrf %783 }
 0x2c3   :  { %p948_p2 = scmp.ne.s32.totalorder %s784_s30, 0 }
 0x2c5   :  { %788 = shalt.err (%p948_p2)  }

</bundles_post_ra>
